<compile_context>
chip_gen: v7x
topology: tpu7x:2x2x1
jax: 0.10.0
libtpu: 0.0.40
codegen_flags: <defaults>
</compile_context>

<pallas_src>
import functools

import numpy as np
import jax
import jax.numpy as jnp
from jax import lax
from jax.experimental import pallas as pl
from jax.experimental.pallas import tpu as pltpu

# ---- module configuration (CausalConv2d __init__ args) ----------------------
IN_CHANNELS = 4
OUT_CHANNELS = 8
KERNEL_SIZE = (3, 3)      # (time, freq)
STRIDE_F = 1              # handled by the banded weight (any stride_f works)
PADDING_F = None          # None -> default symmetric freq padding path
DILATION = (1, 1)
USE_BIAS = True
# TODO(synk): separable=True (depthwise + pointwise) variant not implemented.


def _pad_amounts():
    kt, kf = KERNEL_SIZE
    dt, df = DILATION
    causal_pad = (kt - 1) * dt                      # get_causal_conv_padding
    if PADDING_F is not None:
        # Module: freq pad layer = Identity, Conv2d(padding=(0, padding_f)).
        return causal_pad, PADDING_F, PADDING_F
    pad_f = df * (kf - 1) + 1 - STRIDE_F            # _get_default_freq_padding
    half = pad_f // 2
    if pad_f % 2 == 0:
        return causal_pad, half, half
    return causal_pad, half + 1, half


def _build_band_weight(weight_oihw, f_in, f_out, pad_l):
    """Fold freq taps / stride_f / dilation / freq zero-padding AND the input
    channels into a banded weight of shape (KT, Cin*F_in, F_out*Cout):

        band[ih, ci*F_in + fi, fo*Cout + co] = w[co, ci, ih, iw]
          with fi = fo*stride_f + iw*df - pad_l   (only if 0 <= fi < F_in).

    Taps that would read the (zero) frequency padding have no entry, so the
    freq padding never needs to be materialised.
    """
    kt, kf = KERNEL_SIZE
    _, df = DILATION
    w = np.asarray(weight_oihw, dtype=np.float32)   # (Cout, Cin, KT, KF)
    cout, cin = w.shape[0], w.shape[1]
    band = np.zeros((kt, cin * f_in, f_out * cout), np.float32)
    for ih in range(kt):
        for iw in range(kf):
            for fo in range(f_out):
                fi = fo * STRIDE_F + iw * df - pad_l
                if 0 <= fi < f_in:
                    # (Cin, Cout) slab for this (ih, iw, fo) triple.
                    band[ih, fi::f_in, fo * cout:(fo + 1) * cout] = \
                        w[:, :, ih, iw].T
    return jnp.asarray(band)


def causal_conv2d_kernel(x_ref, w_ref, b_ref, o_ref, xpad_ref, *,
                         cin, kt, dt, causal_pad, t_out, f_in, n_out):
    """One batch element per grid step.

    x_ref:    (1, Cin, T, F)               raw NCHW block, VMEM
    w_ref:    (KT, Cin*F, F_out*Cout)      banded weight, VMEM (grid-invariant)
    b_ref:    (1, F_out*Cout)              bias tiled over F_out, VMEM
    o_ref:    (1, T_out, F_out*Cout)       lane-dense output block, VMEM
    xpad_ref: (T+causal_pad, Cin*F)        scratch: causal pad + channel pack
    """
    # Fused causal time padding: zero the pad rows once.
    if causal_pad > 0:
        xpad_ref[0:causal_pad, :] = jnp.zeros(
            (causal_pad, cin * f_in), jnp.float32)

    # Pack channels along the lane axis: (Cin, T, F) -> rows of (T, Cin*F).
    for ci in range(cin):
        xpad_ref[causal_pad:, ci * f_in:(ci + 1) * f_in] = x_ref[0, ci]

    # Bias-initialised accumulator, (T_out, F_out*Cout): lane axis fully dense.
    acc = jnp.broadcast_to(b_ref[...], (t_out, n_out)).astype(jnp.float32)

    # KT matmuls (T_out, Cin*F) @ (Cin*F, F_out*Cout); freq taps, stride and
    # dilation live inside the banded weight, Cin is part of the contraction.
    # (bf16 operands would double MXU throughput if tolerance allowed; kept
    #  f32 to match the reference within 1e-4.)
    for ih in range(kt):
        lhs = xpad_ref[ih * dt:ih * dt + t_out, :]     # (T_out, Cin*F)
        acc = acc + jnp.dot(lhs, w_ref[ih],
                            preferred_element_type=jnp.float32)

    o_ref[0] = acc.astype(o_ref.dtype)


def causal_conv2d(x_nchw, weight_oihw, bias):
    """x_nchw: (B, Cin, T, F) float32 -> (B, Cout, T_out, F_out) (NCHW)."""
    B, Cin, T, F = x_nchw.shape
    Cout = weight_oihw.shape[0]
    kt, kf = KERNEL_SIZE
    dt, df = DILATION
    causal_pad, pad_l, pad_r = _pad_amounts()

    T_out = T                                        # causal conv preserves T
    F_out = (F + pad_l + pad_r - df * (kf - 1) - 1) // STRIDE_F + 1
    N_out = F_out * Cout                             # 16*8 = 128 -> lane-dense

    band = _build_band_weight(weight_oihw, F, F_out, pad_l)  # (KT,Cin*F,N_out)
    if USE_BIAS:
        bias_t = jnp.tile(bias.astype(jnp.float32), F_out).reshape(1, N_out)
    else:
        bias_t = jnp.zeros((1, N_out), jnp.float32)

    kernel = functools.partial(
        causal_conv2d_kernel, cin=Cin, kt=kt, dt=dt, causal_pad=causal_pad,
        t_out=T_out, f_in=F, n_out=N_out)

    out_flat = pl.pallas_call(
        kernel,
        out_shape=jax.ShapeDtypeStruct((B, T_out, N_out), x_nchw.dtype),
        grid_spec=pltpu.PrefetchScalarGridSpec(
            num_scalar_prefetch=0,
            grid=(B,),
            in_specs=[
                pl.BlockSpec((1, Cin, T, F), lambda b: (b, 0, 0, 0)),
                pl.BlockSpec((kt, Cin * F, N_out), lambda b: (0, 0, 0)),
                pl.BlockSpec((1, N_out), lambda b: (0, 0)),
            ],
            out_specs=pl.BlockSpec((1, T_out, N_out), lambda b: (b, 0, 0)),
            scratch_shapes=[
                pltpu.VMEM((T + causal_pad, Cin * F), jnp.float32)],
        ),
        compiler_params=pltpu.CompilerParams(dimension_semantics=("parallel",)),
    )(x_nchw, band, bias_t)

    # (B, T_out, F_out*Cout) -> NCHW.  Output-only permute of a tiny tensor.
    out = out_flat.reshape(B, T_out, F_out, Cout)
    return jnp.transpose(out, (0, 3, 1, 2))


def reference_conv(x_nchw, weight_oihw, bias):
    """Pure-JAX reference matching the PyTorch module."""
    causal_pad, pad_l, pad_r = _pad_amounts()
    xp = jnp.pad(x_nchw, ((0, 0), (0, 0), (causal_pad, 0), (pad_l, pad_r)))
    y = lax.conv_general_dilated(
        xp, weight_oihw,
        window_strides=(1, STRIDE_F),
        padding='VALID',
        rhs_dilation=DILATION,
        dimension_numbers=('NCHW', 'OIHW', 'NCHW'))
    if USE_BIAS:
        y = y + bias[None, :, None, None]
    return y


if __name__ == "__main__":
    key = jax.random.PRNGKey(0)
    kx, kw, kb = jax.random.split(key, 3)

    # NCHW input: (batch=2, channels=4, time=16, freq=16)
    x = jax.random.normal(kx, (2, IN_CHANNELS, 16, 16), dtype=jnp.float32)
    # Deterministic synthetic parameters (Conv2d weight OIHW + bias)
    weight = 0.1 * jax.random.normal(
        kw, (OUT_CHANNELS, IN_CHANNELS, KERNEL_SIZE[0], KERNEL_SIZE[1]),
        dtype=jnp.float32)
    bias = 0.1 * jax.random.normal(kb, (OUT_CHANNELS,), dtype=jnp.float32)

    out = causal_conv2d(x, weight, bias)
    out = jax.block_until_ready(out)

    ref = reference_conv(x, weight, bias)
    assert out.shape == ref.shape, (out.shape, ref.shape)
    assert jnp.allclose(out, ref, atol=2e-4, rtol=2e-4), float(
        jnp.max(jnp.abs(out - ref)))

    print("KERNEL_OK")
</pallas_src>

<mosaic_0001>
module attributes {stable_mosaic.version = 11 : i64} {
  func.func @causal_conv2d_kernel(%arg0: i32, %arg1: memref<1x4x16x16xf32, #tpu.memory_space<vmem>>, %arg2: memref<3x64x128xf32, #tpu.memory_space<vmem>>, %arg3: memref<1x128xf32, #tpu.memory_space<vmem>>, %arg4: memref<1x16x128xf32, #tpu.memory_space<vmem>>, %arg5: memref<18x64xf32, #tpu.memory_space<vmem>>) attributes {dimension_semantics = [#tpu.dimension_semantics<parallel>], iteration_bounds = array<i64: 2>, scalar_prefetch = 0 : i64, scratch_operands = 1 : i64, tpu.core_type = #tpu.core_type<tc>, window_params = [{transform_indices = @transform_0, window_bounds = array<i64: 1, 4, 16, 16>}, {pipeline_mode = #tpu.pipeline_mode<synchronous>, transform_indices = @transform_1, window_bounds = array<i64: 3, 64, 128>}, {pipeline_mode = #tpu.pipeline_mode<synchronous>, transform_indices = @transform_2, window_bounds = array<i64: 1, 128>}, {transform_indices = @transform_3, window_bounds = array<i64: 1, 16, 128>}]} {
    %cst = arith.constant 0.000000e+00 : f32
    %0 = vector.broadcast %cst : f32 to vector<2x64xf32>
    %c0 = arith.constant 0 : index
    %c0_0 = arith.constant 0 : index
    %1 = vector.load %arg5[%c0, %c0_0] : memref<18x64xf32, #tpu.memory_space<vmem>>, vector<2x64xf32>
    tpu.vector_store %arg5[%c0, %c0_0], %0 {strides = array<i32>} : memref<18x64xf32, #tpu.memory_space<vmem>>, vector<2x64xf32>,
    %c0_1 = arith.constant 0 : index
    %c0_2 = arith.constant 0 : index
    %c0_3 = arith.constant 0 : index
    %c0_4 = arith.constant 0 : index
    %2 = vector.load %arg1[%c0_1, %c0_2, %c0_3, %c0_4] : memref<1x4x16x16xf32, #tpu.memory_space<vmem>>, vector<1x1x16x16xf32>
    %3 = vector.shape_cast %2 : vector<1x1x16x16xf32> to vector<16x16xf32>
    %c2 = arith.constant 2 : index
    %c0_5 = arith.constant 0 : index
    %4 = vector.load %arg5[%c2, %c0_5] : memref<18x64xf32, #tpu.memory_space<vmem>>, vector<16x16xf32>
    tpu.vector_store %arg5[%c2, %c0_5], %3 {strides = array<i32>} : memref<18x64xf32, #tpu.memory_space<vmem>>, vector<16x16xf32>,
    %c0_6 = arith.constant 0 : index
    %c1 = arith.constant 1 : index
    %c0_7 = arith.constant 0 : index
    %c0_8 = arith.constant 0 : index
    %5 = vector.load %arg1[%c0_6, %c1, %c0_7, %c0_8] : memref<1x4x16x16xf32, #tpu.memory_space<vmem>>, vector<1x1x16x16xf32>
    %6 = vector.shape_cast %5 : vector<1x1x16x16xf32> to vector<16x16xf32>
    %c2_9 = arith.constant 2 : index
    %c16 = arith.constant 16 : index
    %7 = vector.load %arg5[%c2_9, %c16] : memref<18x64xf32, #tpu.memory_space<vmem>>, vector<16x16xf32>
    tpu.vector_store %arg5[%c2_9, %c16], %6 {strides = array<i32>} : memref<18x64xf32, #tpu.memory_space<vmem>>, vector<16x16xf32>,
    %c0_10 = arith.constant 0 : index
    %c2_11 = arith.constant 2 : index
    %c0_12 = arith.constant 0 : index
    %c0_13 = arith.constant 0 : index
    %8 = vector.load %arg1[%c0_10, %c2_11, %c0_12, %c0_13] : memref<1x4x16x16xf32, #tpu.memory_space<vmem>>, vector<1x1x16x16xf32>
    %9 = vector.shape_cast %8 : vector<1x1x16x16xf32> to vector<16x16xf32>
    %c2_14 = arith.constant 2 : index
    %c32 = arith.constant 32 : index
    %10 = vector.load %arg5[%c2_14, %c32] : memref<18x64xf32, #tpu.memory_space<vmem>>, vector<16x16xf32>
    tpu.vector_store %arg5[%c2_14, %c32], %9 {strides = array<i32>} : memref<18x64xf32, #tpu.memory_space<vmem>>, vector<16x16xf32>,
    %c0_15 = arith.constant 0 : index
    %c3 = arith.constant 3 : index
    %c0_16 = arith.constant 0 : index
    %c0_17 = arith.constant 0 : index
    %11 = vector.load %arg1[%c0_15, %c3, %c0_16, %c0_17] : memref<1x4x16x16xf32, #tpu.memory_space<vmem>>, vector<1x1x16x16xf32>
    %12 = vector.shape_cast %11 : vector<1x1x16x16xf32> to vector<16x16xf32>
    %c2_18 = arith.constant 2 : index
    %c48 = arith.constant 48 : index
    %13 = vector.load %arg5[%c2_18, %c48] : memref<18x64xf32, #tpu.memory_space<vmem>>, vector<16x16xf32>
    tpu.vector_store %arg5[%c2_18, %c48], %12 {strides = array<i32>} : memref<18x64xf32, #tpu.memory_space<vmem>>, vector<16x16xf32>,
    %c0_19 = arith.constant 0 : index
    %c0_20 = arith.constant 0 : index
    %14 = vector.load %arg3[%c0_19, %c0_20] : memref<1x128xf32, #tpu.memory_space<vmem>>, vector<1x128xf32>
    %15 = vector.shape_cast %14 : vector<1x128xf32> to vector<1x128xf32>
    %16 = vector.broadcast %15 : vector<1x128xf32> to vector<16x128xf32>
    %c0_21 = arith.constant 0 : index
    %c0_22 = arith.constant 0 : index
    %17 = vector.load %arg5[%c0_21, %c0_22] : memref<18x64xf32, #tpu.memory_space<vmem>>, vector<16x64xf32>
    %c0_23 = arith.constant 0 : index
    %c0_24 = arith.constant 0 : index
    %c0_25 = arith.constant 0 : index
    %18 = vector.load %arg2[%c0_23, %c0_24, %c0_25] : memref<3x64x128xf32, #tpu.memory_space<vmem>>, vector<1x64x128xf32>
    %19 = vector.shape_cast %18 : vector<1x64x128xf32> to vector<64x128xf32>
    %cst_26 = arith.constant dense<0.000000e+00> : vector<16x128xf32>
    %20 = tpu.matmul %17, %19, %cst_26 {dimension_numbers = #tpu.dot_dimension_numbers<[1], [0], [0], [1], [0, 0, 1, 1], [], []>} : vector<16x64xf32>, vector<64x128xf32>, vector<16x128xf32> -> vector<16x128xf32>
    %21 = arith.addf %16, %20 : vector<16x128xf32>
    %c1_27 = arith.constant 1 : index
    %c0_28 = arith.constant 0 : index
    %22 = vector.load %arg5[%c1_27, %c0_28] : memref<18x64xf32, #tpu.memory_space<vmem>>, vector<16x64xf32>
    %c1_29 = arith.constant 1 : index
    %c0_30 = arith.constant 0 : index
    %c0_31 = arith.constant 0 : index
    %23 = vector.load %arg2[%c1_29, %c0_30, %c0_31] : memref<3x64x128xf32, #tpu.memory_space<vmem>>, vector<1x64x128xf32>
    %24 = vector.shape_cast %23 : vector<1x64x128xf32> to vector<64x128xf32>
    %cst_32 = arith.constant dense<0.000000e+00> : vector<16x128xf32>
    %25 = tpu.matmul %22, %24, %cst_32 {dimension_numbers = #tpu.dot_dimension_numbers<[1], [0], [0], [1], [0, 0, 1, 1], [], []>} : vector<16x64xf32>, vector<64x128xf32>, vector<16x128xf32> -> vector<16x128xf32>
    %26 = arith.addf %21, %25 : vector<16x128xf32>
    %c2_33 = arith.constant 2 : index
    %c0_34 = arith.constant 0 : index
    %27 = vector.load %arg5[%c2_33, %c0_34] : memref<18x64xf32, #tpu.memory_space<vmem>>, vector<16x64xf32>
    %c2_35 = arith.constant 2 : index
    %c0_36 = arith.constant 0 : index
    %c0_37 = arith.constant 0 : index
    %28 = vector.load %arg2[%c2_35, %c0_36, %c0_37] : memref<3x64x128xf32, #tpu.memory_space<vmem>>, vector<1x64x128xf32>
    %29 = vector.shape_cast %28 : vector<1x64x128xf32> to vector<64x128xf32>
    %cst_38 = arith.constant dense<0.000000e+00> : vector<16x128xf32>
    %30 = tpu.matmul %27, %29, %cst_38 {dimension_numbers = #tpu.dot_dimension_numbers<[1], [0], [0], [1], [0, 0, 1, 1], [], []>} : vector<16x64xf32>, vector<64x128xf32>, vector<16x128xf32> -> vector<16x128xf32>
    %31 = arith.addf %26, %30 : vector<16x128xf32>
    %c0_39 = arith.constant 0 : index
    %c0_40 = arith.constant 0 : index
    %c0_41 = arith.constant 0 : index
    %32 = vector.load %arg4[%c0_39, %c0_40, %c0_41] : memref<1x16x128xf32, #tpu.memory_space<vmem>>, vector<1x16x128xf32>
    %33 = vector.shape_cast %32 : vector<1x16x128xf32> to vector<16x128xf32>
    %34 = vector.shape_cast %31 : vector<16x128xf32> to vector<1x16x128xf32>
    tpu.vector_store %arg4[%c0_39, %c0_40, %c0_41], %34 {strides = array<i32>} : memref<1x16x128xf32, #tpu.memory_space<vmem>>, vector<1x16x128xf32>,
    return
  }
  func.func @transform_0(%arg0: i32) -> (i32, i32, i32, i32) {
    %c0_i32 = arith.constant 0 : i32
    %c0_i32_0 = arith.constant 0 : i32
    %c0_i32_1 = arith.constant 0 : i32
    %c0_i32_2 = arith.constant 0 : i32
    return %arg0, %c0_i32, %c0_i32_0, %c0_i32_1 : i32, i32, i32, i32
  }
  func.func @transform_1(%arg0: i32) -> (i32, i32, i32) {
    %c0_i32 = arith.constant 0 : i32
    %c0_i32_0 = arith.constant 0 : i32
    %c0_i32_1 = arith.constant 0 : i32
    %c0_i32_2 = arith.constant 0 : i32
    return %c0_i32, %c0_i32_0, %c0_i32_1 : i32, i32, i32
  }
  func.func @transform_2(%arg0: i32) -> (i32, i32) {
    %c0_i32 = arith.constant 0 : i32
    %c0_i32_0 = arith.constant 0 : i32
    %c0_i32_1 = arith.constant 0 : i32
    return %c0_i32, %c0_i32_0 : i32, i32
  }
  func.func @transform_3(%arg0: i32) -> (i32, i32, i32) {
    %c0_i32 = arith.constant 0 : i32
    %c0_i32_0 = arith.constant 0 : i32
    %c0_i32_1 = arith.constant 0 : i32
    return %arg0, %c0_i32, %c0_i32_0 : i32, i32, i32
  }
}

</mosaic_0001>

<bundles_post_ra>
// kernel: tpu_custom_call.1
= control target key start
LH: loop header
LB: loop body
LE: loop exit
PB: predicated region body
PF: predicated region fallthrough
CT: control target
= control target key end

     0   :  { %8 = vsyncpa [#allocation4], 0  ;;  %s1268_s0 = inlined_call_operand.hbm [shape: f32[2,4,16,16], index: 0, kind: input, shape index: {}]   ;;  %s1269_s1 = inlined_call_operand.hbm [shape: f32[3,64,128], index: 1, kind: input, shape index: {}]   ;;  %s1270_s2 = inlined_call_operand.vmem [shape: f32[1,128], index: 2, kind: input, shape index: {}]   ;;  %s1271_s3 = inlined_call_operand.hbm [shape: f32[2,16,128], index: 3, kind: output, shape index: {}]  }
   0x1   :  { %10 = vsyncpa [#allocation4 + $0x1], 0 }
   0x2   :  { %11 = vsyncpa [#allocation7], 0 }
   0x3   :  { %12 = vsyncpa [#allocation5], 0 }
   0x4   :  { %14 = vsyncpa [#allocation5 + $0x1], 0  ;;  %s1039_s12 = smov 0   ;;  %s1041_s13 = smov 0  }
   0x5   :  { %s1043_s14 = smov 0   ;;  %s1045_s15 = smov 0  }
   0x6 LB: > { %s1060_s16 = sadd.s32 4294967295, %s1006_s15   ;;  %s641_s17 = sadd.s32 4294967294, %s1006_s15   ;;  %s1006_s15 = sphi %s1045_s15, %s1291_s15   ;;  %s1002_s14 = sphi %s1043_s14, %s1290_s14   ;;  %s998_s13 = sphi %s1041_s13, %s1289_s13   ;;  %s994_s12 = sphi %s1039_s12, %s1288_s12  }
   0x7   : > { %p40_p0 = scmp.ne.s32.totalorder %s998_s13, %s994_s12  ;;  %p1272_p1 = scmp.eq.s32.totalorder %s1060_s16, 0 }
   0x8   : > { %p112_p3 = scmp.eq.s32.totalorder %s641_s17, 1  ;;  %p642_p5 = scmp.ge.s32.totalorder %s1006_s15, 1 }
   0x9   : > { %p1069_p4 = por %p1272_p1, %p40_p0  ;;  %p119_p7 = scmp.lt.s32.totalorder %s1006_s15, 3 }
   0xa   : > { %p1074_p6 = por %p112_p3, %p40_p0  ;;  %s1008_s21 = smov [#allocation6]  }
   0xb   : > { %s1275_s18 = scalar_select %p1069_p4, 1, 0 }
   0xc   : > { %s1276_s19 = scalar_select %p1074_p6, 1, 0 }
   0xd   : > { %p1079_p8 = pnand %p642_p5, %p119_p7  ;;  %s131_s22 = sshll.u32 %s1008_s21, 4  ;;  %s1083_s22 = int_to_ptr.vmem [resolvable:$true] %s131_s22 }
   0xe   : > { %s1095_s24 = sadd.s32 1, %s1006_s15   ;;  %s27_s25 = sadd.s32 1, %s1002_s14 }
   0xf   : > { %s1277_s20 = scalar_select %p1079_p8, 1, 0 }
  0x10   : > { %p821_p9 = pneg %p1079_p8  ;;  %s24_s26 = ssub.s32 %s1006_s15, %s1095_s24 }
  0x11   : > { %s878_s29 = scalar_lea.hbm %s1269_s1, 3072 }
  0x12   : > { %p1090_p11 = pnand %p821_p9, %p1272_p1  ;;  %p879_p12 = scmp.ne.s32.totalorder %s1269_s1, %s878_s29 }
  0x13   : > { %p885_p5 = scmp.lt.u32.totalorder %s878_s29, %s1269_s1 }
  0x14   : > { %p880_p13 = pneg %p1090_p11 }
  0x16   : > { %p881_p0 = pnand %p880_p13, %p879_p12 }
  0x18   : > { %p882_p3 = pneg %p881_p0 }
  0x1a   : > { %p887_p7 = pnand %p885_p5, %p882_p3 }
  0x1c   : > { %890 = shalt.err (!%p887_p7)
}
  0x1d   : > { %s891_s7 = scalar_lea.vmem %s1083_s22, 3072  ;;  %p899_p2 = scmp.lt.s32.totalorder %s1083_s22, %s1083_s22 }
  0x1e   : > { %p892_p9 = scmp.ne.s32.totalorder %s1083_s22, %s891_s7  ;;  %p900_p6 = scmp.lt.s32.totalorder %s891_s7, %s891_s7 }
  0x20   : > { %p894_p10 = pnand %p892_p9, %p880_p13  ;;  %p901_p4 = por %p900_p6, %p899_p2 }
  0x22   : > { %p895_p1 = pneg %p894_p10 }
  0x24   : > { %p902_p8 = pnand %p901_p4, %p895_p1 }
  0x26   : > { %905 = shalt.err (!%p902_p8)
}
  0x27   : > { %s1009_s8 = smov 128   ;;  %s1010_s9 = smov 8  }
  0x28   : > { %824 = dma.hbm_to_vmem [thread:$0]  (!%p1090_p11), %s1269_s1, 3072, %s1083_s22, [#allocation7], %s1009_s8, %s1009_s8, %s1010_s9  }
  0x29   : > { %p25_p1 = scmp.eq.s32.totalorder %s24_s26, 0  ;;  %p34_p2 = scmp.ne.s32.totalorder %s1002_s14, %s998_s13 }
  0x2a   : > { %p35_p4 = scmp.eq.s32.totalorder %s1006_s15, 0  ;;  %p834_p6 = scmp.lt.s32.totalorder %s1006_s15, 2 }
  0x2b   : > { %s1129_s17 = scalar_select %p25_p1, %s1002_s14, %s27_s25  }
  0x2c   : > { %p36_p8 = por %p35_p4, %p34_p2  ;;  %p1279_p10 = scmp.eq.s32.totalorder %s1060_s16, 1 }
  0x2d   : > { %s148_s23 = sand.u32 1, %s1002_s14   ;;  %s670_s27 = sshll.u32 %s1006_s15, 10 }
  0x2e   : > { %p1133_p12 = por %p1279_p10, %p34_p2  ;;  %s645_s28 = sshll.u32 %s148_s23, 6 }
  0x2f   : > { %s1142_s4 = scalar_lea.hbm %s1268_s0, %s670_s27  ;;  %s152_s22 = scalar_lea.vmem [#allocation3], %s645_s28 }
  0x30   : > { %s159_s25 = sshll.u32 %s152_s22, 4  ;;  %p1144_p11 = pnand %p834_p6, %p36_p8  ;;  %s1148_s25 = int_to_ptr.vmem [resolvable:$true] %s159_s25 }
  0x31   : > { %s1150_s5 = scalar_lea.sflag [#allocation4], %s148_s23  ;;  %s906_s6 = scalar_lea.hbm %s1142_s4, 1024 }
  0x32   : > { %p907_p13 = scmp.ne.s32.totalorder %s1142_s4, %s906_s6  ;;  %p908_p0 = pneg %p1144_p11 }
  0x33   : > { %s911_s11 = scalar_lea.hbm %s1268_s0, 2048  ;;  %p912_p7 = scmp.lt.u32.totalorder %s1142_s4, %s1268_s0 }
  0x34   : > { %p909_p3 = pnand %p908_p0, %p907_p13  ;;  %p913_p9 = scmp.lt.u32.totalorder %s911_s11, %s906_s6 }
  0x35   : > { %p915_p2 = scmp.lt.u32.totalorder %s906_s6, %s1142_s4 }
  0x36   : > { %p910_p5 = pneg %p909_p3  ;;  %p914_p1 = por %p913_p9, %p912_p7 }
  0x38   : > { %p916_p4 = por %p915_p2, %p914_p1 }
  0x3a   : > { %p917_p6 = pnand %p916_p4, %p910_p5 }
  0x3c   : > { %920 = shalt.err (!%p917_p6)
}
  0x3d   : > { %s921_s23 = scalar_lea.vmem %s1148_s25, 1024  ;;  %s1011_s29 = smov [#allocation3]  }
  0x3e   : > { %p922_p8 = scmp.ne.s32.totalorder %s1148_s25, %s921_s23  ;;  %s926_s30 = sshll.u32 %s1011_s29, 4  ;;  %s927_s30 = int_to_ptr.vmem [resolvable:$false] %s926_s30 }
  0x3f   : > { %s928_s22 = scalar_lea.vmem %s927_s30, 2048  ;;  %p929_p3 = scmp.lt.s32.totalorder %s1148_s25, %s927_s30 }
  0x40   : > { %p924_p10 = pnand %p922_p8, %p908_p0  ;;  %p930_p7 = scmp.lt.s32.totalorder %s928_s22, %s921_s23 }
  0x42   : > { %p925_p13 = pneg %p924_p10  ;;  %p931_p9 = por %p930_p7, %p929_p3 }
  0x44   : > { %p932_p1 = pnand %p931_p9, %p925_p13 }
  0x46   : > { %935 = shalt.err (!%p932_p1)
}
  0x47   : > { %828 = dma.hbm_to_vmem [thread:$0]  (!%p1144_p11), %s1142_s4, 1024, %s1148_s25, %s1150_s5, %s1009_s8, %s1009_s8, %s1010_s9  }
  0x48   : > { %p1282_p0 = scmp.ne.s32.totalorder %s1277_s20, 0 }
  0x49   : > { %s1184_s6 = sand.u32 (!%p1282_p0), 1, %s998_s13   ;;  %p1283_p5 = scmp.ne.s32.totalorder (!%p1282_p0), %s1275_s18, 0 }
  0x4a   : > { %171 = sbr.rel (%p1282_p0) target bundleno = 466 (0x1d2), region = 32  ;;  %s649_s7 = sshll.u32 (!%p1282_p0), %s1184_s6, 6 }
  0x4b   : > { %s174_s10 = scalar_lea.sflag (!%p1282_p0), [#allocation4], %s1184_s6  ;;  %s1188_s11 = scalar_lea.vmem (!%p1282_p0), [#allocation3], %s649_s7 }
  0x51   : > { %981 = dma.done.wait (%p1283_p5), %s174_s10, 1024  }
  0x52   : > { %983 = vsyncadd (%p1283_p5), %s174_s10, 4294966272  ;;  %p1284_p11 = scmp.eq.s32.totalorder %s1060_s16, 0 }
  0x54   : > { %985 = dma.done.wait (%p1284_p11), [#allocation7], 3072   ;;  %p1285_p2 = pmov %p1284_p11 }
  0x55   : > { %vm204_vm0 = vcmask 517120   ;;  %v1012_v0 = vmov 0.0   ;;  %v654_v1 = vld [vmem:[%s1188_s11 + $0x20] sm:$0xff]  ;;  %v652_v2 = vld [vmem:[%s1188_s11 + $0x10] sm:$0xff]  ;;  %vm208_vm1 = vcmask 130048   ;;  %s1013_s18 = smov 32  }
  0x56   : > { %987 = vsyncadd (%p1285_p2), [#allocation7], 4294964224  ;;  %205 = vst.msk [vmem:[#allocation2] sm:$0x3] %vm204_vm0, %v1012_v0  ;;  %230 = vrot.lane.b32.xlu1 %v654_v1, %s1013_s18  ;;  %s1014_s20 = smov 16   ;;  %v655_v3 = vld [vmem:[%s1188_s11 + $0x28] sm:$0xff] }
  0x57   : > { %216 = vrot.lane.b32.xlu0 %v652_v2, %s1014_s20  ;;  %v357_v4 = vld [vmem:[#allocation6 + $0x40] sm:$0xff]  ;;  %v653_v5 = vld [vmem:[%s1188_s11 + $0x18] sm:$0xff]  ;;  %v358_v7 = vld [vmem:[#allocation6 + $0x48] sm:$0xff]  ;;  %s1015_s8 = smov 48   ;;  %vm222_vm2 = vcmask 261248   ;;  %vm236_vm3 = vcmask 392448  }
  0x58   : > { %v206_v6 = vld [vmem:[%s1188_s11] sm:$0xff]  ;;  %v775_v8 = vpack.c.bf16 %v358_v7, %v357_v4  ;;  %v263_v10 = vld [vmem:[#allocation6 + $0x8] sm:$0xff]  ;;  %v657_v12 = vld [vmem:[%s1188_s11 + $0x38] sm:$0xff]  ;;  %vm250_vm4 = vcmask 523648   ;;  %vm270_vm5 = vcmask 523264   ;;  %s651_s9 = sshll.u32 %s1184_s6, 4 }
  0x59   : > { %209 = vst.msk [vmem:[#allocation2 + $0x2] sm:$0xff] %vm208_vm1, %v206_v6  ;;  %v262_v9 = vld [vmem:[#allocation6] sm:$0xff]  ;;  %v207_v11 = vld [vmem:[%s1188_s11 + $0x8] sm:$0xff]  ;;  %v359_v14 = vld [vmem:[#allocation6 + $0x50] sm:$0xff]  ;;  %s203_s26 = scalar_lea.vmem [#allocation8], %s651_s9  ;;  %s671_s27 = sshll.u32 %s1060_s16, 8 }
  0x5a   : > { %v759_v13 = vpack.c.bf16 %v263_v10, %v262_v9  ;;  %210 = vst.msk [vmem:[#allocation2 + $0xa] sm:$0xff] %vm208_vm1, %v207_v11  ;;  %v360_v15 = vld [vmem:[#allocation6 + $0x58] sm:$0xff]  ;;  %v264_v16 = vld [vmem:[#allocation6 + $0x10] sm:$0xff]  ;;  %232 = vrot.lane.b32.xlu1 %v655_v3, %s1013_s18  ;;  %v361_v19 = vld [vmem:[#allocation6 + $0x60] sm:$0xff]  ;;  %776 = vmatprep.subr.bf16.mxu0 %v775_v8  ;;  %s558_s5 = sshll.u32 %s203_s26, 4  ;;  %s1224_s29 = scalar_lea.hbm %s1271_s3, %s671_s27  ;;  %s1219_s5 = int_to_ptr.vmem [resolvable:$true] %s558_s5 }
  0x5b   : > { %218 = vrot.lane.b32.xlu0 %v653_v5, %s1014_s20  ;;  %v779_v17 = vpack.c.bf16 %v360_v15, %v359_v14  ;;  %v265_v18 = vld [vmem:[#allocation6 + $0x18] sm:$0xff]  ;;  %v362_v20 = vld [vmem:[#allocation6 + $0x68] sm:$0xff]  ;;  %v656_v21 = vld [vmem:[%s1188_s11 + $0x30] sm:$0xff]  ;;  %778 = vmatpush3.bf16.msra.mxu0 %v775_v8  ;;  %s545_s30 = scalar_lea.sflag [#allocation5], %s1184_s6  ;;  %s936_s16 = scalar_lea.vmem %s1219_s5, 256 }
  0x5c   : > { %760 = vmatprep.subr.bf16.mxu1 %v759_v13  ;;  %v763_v22 = vpack.c.bf16 %v265_v18, %v264_v16  ;;  %v266_v23 = vld [vmem:[#allocation6 + $0x20] sm:$0xff]  ;;  %v267_v24 = vld [vmem:[#allocation6 + $0x28] sm:$0xff]  ;;  %v783_v25 = vpack.c.bf16 %v362_v20, %v361_v19  ;;  %v363_v27 = vld [vmem:[#allocation6 + $0x70] sm:$0xff]  ;;  %p937_p4 = scmp.ne.s32.totalorder %s1219_s5, %s936_s16  ;;  %s1016_s22 = smov [#allocation8]  }
  0x5d   : > { %762 = vmatpush3.bf16.msra.mxu1 %v759_v13  ;;  %780 = vmatprep.subr.bf16.mxu0 %v779_v17  ;;  %v767_v26 = vpack.c.bf16 %v267_v24, %v266_v23  ;;  %v364_v28 = vld [vmem:[#allocation6 + $0x78] sm:$0xff]  ;;  %v268_v29 = vld [vmem:[#allocation6 + $0x30] sm:$0xff]  ;;  %v451_v33 = vld [vmem:[#allocation6 + $0x80] sm:$0xff]  ;;  %s940_s7 = sshll.u32 %s1016_s22, 4  ;;  %s941_s7 = int_to_ptr.vmem [resolvable:$false] %s940_s7 }
  0x5e   : > { %764 = vmatprep.subr.bf16.mxu1 %v763_v22  ;;  %246 = vrot.lane.b32.xlu1 %v657_v12, %s1015_s8  ;;  %v269_v30 = vld [vmem:[#allocation6 + $0x38] sm:$0xff]  ;;  %v787_v31 = vpack.c.bf16 %v364_v28, %v363_v27  ;;  %v452_v34 = vld [vmem:[#allocation6 + $0x88] sm:$0xff]  ;;  %v453_v42 = vld [vmem:[#allocation6 + $0x90] sm:$0xff]  ;;  %p938_p6 = pnand %p937_p4, %p1133_p12  ;;  %s942_s10 = scalar_lea.vmem %s941_s7, 512 }
  0x5f   : > { %244 = vrot.lane.b32.xlu0 %v656_v21, %s1015_s8  ;;  %782 = vmatpush3.bf16.msra.mxu0 %v779_v17  ;;  %v771_v32 = vpack.c.bf16 %v269_v30, %v268_v29  ;;  %v791_v35 = vpack.c.bf16 %v452_v34, %v451_v33  ;;  %v454_v43 = vld [vmem:[#allocation6 + $0x98] sm:$0xff]  ;;  %v455_v49 = vld [vmem:[#allocation6 + $0xa0] sm:$0xff]  ;;  %v456_v50 = vld [vmem:[#allocation6 + $0xa8] sm:$0xff]  ;;  %p943_p10 = scmp.lt.s32.totalorder %s1219_s5, %s941_s7  ;;  %p944_p13 = scmp.lt.s32.totalorder %s942_s10, %s936_s16 }
  0x60   : > { %784 = vmatprep.subr.bf16.mxu0 %v783_v25  ;;  %v795_v47 = vpack.c.bf16 %v454_v43, %v453_v42  ;;  %v799_v52 = vpack.c.bf16 %v456_v50, %v455_v49  ;;  %v457_v53 = vld [vmem:[#allocation6 + $0xb0] sm:$0xff]  ;;  %v458_v54 = vld [vmem:[#allocation6 + $0xb8] sm:$0xff]  ;;  %v658_v59 = vld [vmem:[%s1270_s2] ss:$0 sm:$0xff]  ;;  %p939_p8 = pneg %p938_p6 }
  0x61   : > { %766 = vmatpush3.bf16.msra.mxu1 %v763_v22  ;;  %v803_v55 = vpack.c.bf16 %v458_v54, %v457_v53  ;;  %p945_p3 = por %p944_p13, %p943_p10 }
  0x62   : > { %768 = vmatprep.subr.bf16.mxu1 %v767_v26 }
  0x63   : > { %786 = vmatpush3.bf16.msra.mxu0 %v783_v25  ;;  %p946_p7 = pnand %p945_p3, %p939_p8 }
  0x64   : > { %788 = vmatprep.subr.bf16.mxu0 %v787_v31 }
  0x65   : > { %770 = vmatpush3.bf16.msra.mxu1 %v767_v26 }
  0x66   : > { %772 = vmatprep.subr.bf16.mxu1 %v771_v32 }
  0x67   : > { %790 = vmatpush3.bf16.msra.mxu0 %v787_v31 }
  0x68   : > { %792 = vmatprep.subr.bf16.mxu0 %v791_v35 }
  0x69   : > { %774 = vmatpush3.bf16.msra.mxu1 %v771_v32 }
  0xc8   : > { %v231_v36 = vpop.permute.xlu1 %230 }
  0xc9   : > { %v217_v37 = vpop.permute.xlu0 %216 }
  0xca   : > { %223 = vst.msk [vmem:[#allocation2 + $0x2] sm:$0xff] %vm222_vm2, %v217_v37 }
  0xcb   : > { %237 = vst.msk [vmem:[#allocation2 + $0x2] sm:$0xff] %vm236_vm3, %v231_v36 }
  0xcc   : > { %v233_v38 = vpop.permute.xlu1 %232 }
  0xcd   : > { %v219_v39 = vpop.permute.xlu0 %218 }
  0xce   : > { %224 = vst.msk [vmem:[#allocation2 + $0xa] sm:$0xff] %vm222_vm2, %v219_v39 }
  0xcf   : > { %238 = vst.msk [vmem:[#allocation2 + $0xa] sm:$0xff] %vm236_vm3, %v233_v38 }
  0xd0   : > { %v247_v40 = vpop.permute.xlu1 %246 }
  0xd1   : > { %v245_v41 = vpop.permute.xlu0 %244  ;;  %252 = vst.msk [vmem:[#allocation2 + $0xa] sm:$0xff] %vm250_vm4, %v247_v40 }
  0xd2   : > { %251 = vst.msk [vmem:[#allocation2 + $0x2] sm:$0xff] %vm250_vm4, %v245_v41 }
  0xd8   : > { %v449_v56 = vld [vmem:[#allocation2 + $0xa] sm:$0xff] }
  0xd9   : > { %v260_v44 = vld [vmem:[#allocation2] sm:$0xff]  ;;  %v261_v46 = vld [vmem:[#allocation2 + $0x8] sm:$0xff] }
  0xda   : > { %v354_v45 = vld [vmem:[#allocation2 + $0x1] sm:$0xff]  ;;  %718 = vmatprep.mubr.msk.f32.mxu1 %vm270_vm5, %v260_v44  ;;  %v355_v48 = vld [vmem:[#allocation2 + $0x9] sm:$0xff] }
  0xdb   : > { %737 = vmatprep.mubr.msk.f32.mxu0 %vm270_vm5, %v354_v45  ;;  %719 = vmatmul.mubr.msk.f32.vlgmr.msra.gmra.mrb[0].mxu1 %vm270_vm5, %v261_v46  ;;  %v448_v51 = vld [vmem:[#allocation2 + $0x2] sm:$0xff] }
  0xdc   : > { %738 = vmatmul.mubr.msk.f32.vlgmr.msra.gmra.mrb[0].mxu0 %vm270_vm5, %v355_v48 }
  0xdd   : > { %794 = vmatpush3.bf16.msra.mxu0 %v791_v35  ;;  %756 = vmatprep.mubr.msk.f32.mxu0 %vm270_vm5, %v448_v51 }
  0xde   : > { %796 = vmatprep.subr.bf16.mxu0 %v795_v47 }
  0xe1   : > { %798 = vmatpush3.bf16.msra.mxu0 %v795_v47 }
  0xe2   : > { %800 = vmatprep.subr.bf16.mxu0 %v799_v52 }
  0xe5   : > { %802 = vmatpush3.bf16.msra.mxu0 %v799_v52 }
  0xe6   : > { %804 = vmatprep.subr.bf16.mxu0 %v803_v55 }
  0xe9   : > { %806 = vmatpush3.bf16.msra.mxu0 %v803_v55 }
  0xec   : > { %757 = vmatmul.mubr.msk.f32.vlgmr.msra.gmra.mrb[0].mxu0 %vm270_vm5, %v449_v56 }
 0x1ae   : > { %v720_v57 = vpop.f32.mrb[0].mxu1 }
 0x1af   : > { %v343_v58 = vpop.f32.mrb[1].mxu1  ;;  %v353_v60 = vadd.f32 %v720_v57, %v658_v59 }
 0x1b0   : > { %v352_v61 = vadd.f32 %v658_v59, %v343_v58 }
 0x1bf   : > { %v758_v62 = vpop.f32.mrb[0].mxu0 }
 0x1c0   : > { %v808_v63 = vadd.f32 %v758_v62, %v353_v60  ;;  %v531_v0 = vpop.f32.mrb[1].mxu0 }
 0x1c1   : > { %v810_v1 = vadd.f32 %v531_v0, %v352_v61 }
 0x1c2   : > { %543 = vst [vmem:[%s203_s26 + $0x8] sm:$0xff] %v808_v63 }
 0x1c3   : > { %542 = vst [vmem:[%s203_s26] sm:$0xff] %v810_v1 }
 0x1c4   : > { %949 = shalt.err (!%p946_p7)
}
 0x1c5   : > { %s950_s11 = scalar_lea.hbm %s1224_s29, 256  ;;  %s954_s8 = scalar_lea.hbm %s1271_s3, 512 }
 0x1c6   : > { %p951_p9 = scmp.ne.s32.totalorder %s1224_s29, %s950_s11  ;;  %p955_p5 = scmp.lt.u32.totalorder %s1224_s29, %s1271_s3 }
 0x1c7   : > { %p956_p11 = scmp.lt.u32.totalorder %s954_s8, %s950_s11  ;;  %p958_p4 = scmp.lt.u32.totalorder %s950_s11, %s1224_s29 }
 0x1c8   : > { %p952_p1 = pnand %p951_p9, %p1133_p12 }
 0x1c9   : > { %p957_p2 = por %p956_p11, %p955_p5 }
 0x1ca   : > { %p953_p0 = pneg %p952_p1 }
 0x1cb   : > { %p959_p6 = por %p958_p4, %p957_p2 }
 0x1cd   : > { %p960_p8 = pnand %p959_p6, %p953_p0 }
 0x1cf   : > { %963 = shalt.err (!%p960_p8)
}
 0x1d0   : > { %s1017_s25 = smov 128   ;;  %s1018_s26 = smov 8  }
 0x1d1   : > { %819 = dma.vmem_to_hbm [thread:$0]  (%p1133_p12), %s1219_s5, 256, %s1224_s29, %s545_s30, %s1017_s25, %s1017_s25, %s1018_s26  }
 0x1d2 PF: > { %s573_s27 = sand.u32 1, %s994_s12   ;;  %p1286_p10 = scmp.ne.s32.totalorder %s1276_s19, 0 }
 0x1d3   : > { %p1287_p13 = scmp.ge.s32.totalorder %s1006_s15, 2  ;;  %s574_s28 = scalar_lea.sflag [#allocation5], %s573_s27 }
 0x1d5   : > { %p830_p3 = pnand %p1287_p13, %p1286_p10 }
 0x1d7   : > { %989 = dma.done.wait (!%p830_p3), %s574_s28, 256  }
 0x1d8   : > { %991 = vsyncadd (!%p830_p3), %s574_s28, 4294967040  ;;  %p17_p7 = scmp.ge.s32.totalorder %s1095_s24, 4   ;;  %s1288_s12 = smov %s998_s13 }
 0x1d9   : > { %s1289_s13 = smov %s1002_s14  ;;  %s1290_s14 = smov %s1129_s17 }
 0x1da   : > { %s1291_s15 = smov %s1095_s24  ;;  %19 = sbr.rel (!%p17_p7) target bundleno = 6 (0x6), region = 86 }
 0x1e1   :  { %579 = vsyncpa [#allocation4], 1 }
 0x1e2   :  { %581 = vsyncpa [#allocation4 + $0x1], 1 }
 0x1e3   :  { %582 = vsyncpa [#allocation7], 1 }
 0x1e4   :  { %583 = vsyncpa [#allocation5], 1 }
 0x1e5   :  { %585 = vsyncpa [#allocation5 + $0x1], 1 }

</bundles_post_ra>
